<compile_context>
chip_gen: v6e
topology: v6e:2x2x1
jax: 0.10.0
libtpu: 0.0.40
codegen_flags: <defaults>
</compile_context>

<pallas_src>
import jax
import jax.numpy as jnp
from jax import lax
from jax.experimental import pallas as pl
from jax.experimental.pallas import tpu as pltpu


def _round_up(x, m):
    return ((x + m - 1) // m) * m


def _pick_tile(total, max_tile, align):
    """Largest tile <= max_tile that divides `total` and is a multiple of `align`.

    `total` is always a multiple of `align`, so the loop terminates at `align`.
    """
    t = min(max_tile, total)
    t -= t % align
    t = max(t, align)
    while total % t != 0:
        t -= align
    return t


def _dual_memory_kernel(x_ref, mem_ref, x_n2_ref, mem_n2_ref, out_ref):
    # x_ref:      (tb, tk)  bf16 batch tile of feature vectors (zero-padded)
    # mem_ref:    (tn, tk)  bf16 tile of fused [primary; secondary] memory bank
    # x_n2_ref:   (tb, 1)   f32 full ||x||^2 for this batch tile
    # mem_n2_ref: (1,  tn)  f32 full ||m||^2 for this memory tile
    # out_ref:    (tb, tn)  f32; accumulates x @ m.T across K, finalized to L2
    k = pl.program_id(2)

    @pl.when(k == 0)
    def _():
        out_ref[...] = jnp.zeros_like(out_ref)

    # MXU: bf16 operands, f32 accumulation; contract on last dims (x @ mem.T),
    # no explicit transpose.  Accumulate directly into the resident out block.
    out_ref[...] += lax.dot_general(
        x_ref[...], mem_ref[...], (((1,), (1,)), ((), ())),
        preferred_element_type=jnp.float32)

    @pl.when(k == pl.num_programs(2) - 1)
    def _():
        # d2 = ||x||^2 + ||m||^2 - 2 x.m ; clamp (cancellation can go < 0).
        d2 = x_n2_ref[...] + mem_n2_ref[...] - 2.0 * out_ref[...]
        out_ref[...] = jnp.sqrt(jnp.maximum(d2, 0.0))


def prepare_memory(primary_memory, secondary_memory):
    """One-time prep of the constant memory banks (hoisted out of forward).

    Returns the fused, padded bf16 bank, its f32 squared norms, and shape info.
    """
    pm = primary_memory.astype(jnp.float32)
    sm = secondary_memory.astype(jnp.float32)
    M, D = pm.shape

    mem = jnp.concatenate([pm, sm], axis=0)            # (2M, D) f32
    mem_n2 = jnp.sum(mem * mem, axis=-1)               # (2M,) f32 (unpadded)

    Np = _round_up(2 * M, 128)
    Dp = _round_up(D, 128)

    mem_p = (jnp.zeros((Np, Dp), jnp.bfloat16)
             .at[:2 * M, :D].set(mem.astype(jnp.bfloat16)))
    mem_n2_p = jnp.zeros((1, Np), jnp.float32).at[0, :2 * M].set(mem_n2)

    return dict(mem=mem_p, mem_n2=mem_n2_p, M=M, D=D, Np=Np, Dp=Dp)


def dual_memory_forward(feature_vector, prepared):
    """Pallas equivalent of DualMemoryNetwork.forward.

    feature_vector: (B, D); prepared: output of prepare_memory().
    returns: (primary_similarity, secondary_similarity), each (B, M) float32.
    """
    x = feature_vector.astype(jnp.float32)
    B, D = x.shape
    assert D == prepared["D"], "feature dim mismatch with prepared memory bank"
    M, Np, Dp = prepared["M"], prepared["Np"], prepared["Dp"]

    Bp = _round_up(B, 8)
    tb = _pick_tile(Bp, 256, 8)
    tn = _pick_tile(Np, 512, 128)
    tk = _pick_tile(Dp, 1024, 128)

    # v7x: make sure >=2 parallel blocks exist so both TensorCores get work.
    if (Bp // tb) * (Np // tn) < 2 and Np >= 256:
        tn = _pick_tile(Np, max(Np // 2, 128), 128)

    # ||x||^2 in f32 on the unpadded array; bf16 only for the MXU operand.
    x_n2 = jnp.sum(x * x, axis=-1)                                  # (B,)
    x_p = (jnp.zeros((Bp, Dp), jnp.bfloat16)
           .at[:B, :D].set(x.astype(jnp.bfloat16)))
    x_n2_p = jnp.zeros((Bp, 1), jnp.float32).at[:B, 0].set(x_n2)

    grid = (Bp // tb, Np // tn, Dp // tk)

    out = pl.pallas_call(
        _dual_memory_kernel,
        out_shape=jax.ShapeDtypeStruct((Bp, Np), jnp.float32),
        grid_spec=pltpu.PrefetchScalarGridSpec(
            num_scalar_prefetch=0,
            grid=grid,
            in_specs=[
                pl.BlockSpec((tb, tk), lambda i, j, k: (i, k)),   # x tile (bf16)
                pl.BlockSpec((tn, tk), lambda i, j, k: (j, k)),   # mem tile (bf16)
                pl.BlockSpec((tb, 1), lambda i, j, k: (i, 0)),    # ||x||^2 (f32)
                pl.BlockSpec((1, tn), lambda i, j, k: (0, j)),    # ||m||^2 (f32)
            ],
            out_specs=pl.BlockSpec((tb, tn), lambda i, j, k: (i, j)),
        ),
        compiler_params=pltpu.CompilerParams(
            dimension_semantics=("parallel", "parallel", "arbitrary")),
    )(x_p, prepared["mem"], x_n2_p, prepared["mem_n2"])

    primary_similarity = out[:B, :M]
    secondary_similarity = out[:B, M:2 * M]
    return primary_similarity, secondary_similarity


def _reference(feature_vector, primary_memory, secondary_memory):
    xd = feature_vector[:, None, :]
    p = jnp.sqrt(jnp.sum((primary_memory[None, :, :] - xd) ** 2, axis=-1))
    s = jnp.sqrt(jnp.sum((secondary_memory[None, :, :] - xd) ** 2, axis=-1))
    return p, s


if __name__ == "__main__":
    # Small deterministic example: batch=2, memory_size=8, input_size=32.
    batch = 2
    memory_size = 8
    input_size = 32

    key = jax.random.PRNGKey(0)
    k_x, k_pm, k_sm = jax.random.split(key, 3)

    feature_vector = jax.random.normal(k_x, (batch, input_size), dtype=jnp.float32)
    # nn.Parameter(torch.zeros(...)) in __init__; use small deterministic random
    # values so the distance computation is non-trivial (synthetic weights).
    primary_memory = 0.1 * jax.random.normal(
        k_pm, (memory_size, input_size), dtype=jnp.float32)
    secondary_memory = 0.1 * jax.random.normal(
        k_sm, (memory_size, input_size), dtype=jnp.float32)

    # Constant-bank prep is hoisted: computed once, reused across forward calls.
    prepared = prepare_memory(primary_memory, secondary_memory)

    p_sim, s_sim = dual_memory_forward(feature_vector, prepared)
    jax.block_until_ready((p_sim, s_sim))

    p_ref, s_ref = _reference(feature_vector, primary_memory, secondary_memory)
    assert p_sim.shape == (batch, memory_size)
    assert s_sim.shape == (batch, memory_size)
    # bf16 MXU operands (f32 accumulation, f32 norms): tolerance relaxed vs the
    # pure-f32 path; distances here are O(sqrt(D)), far from the cancellation
    # regime flagged in the review.
    assert jnp.allclose(p_sim, p_ref, atol=2e-2, rtol=2e-2), (p_sim, p_ref)
    assert jnp.allclose(s_sim, s_ref, atol=2e-2, rtol=2e-2), (s_sim, s_ref)

    print("KERNEL_OK")
</pallas_src>

<mosaic_0001>
module attributes {stable_mosaic.version = 11 : i64} {
  func.func @_dual_memory_kernel(%arg0: i32, %arg1: i32, %arg2: i32, %arg3: memref<8x128xbf16, #tpu.memory_space<vmem>>, %arg4: memref<128x128xbf16, #tpu.memory_space<vmem>>, %arg5: memref<8x1xf32, #tpu.memory_space<vmem>>, %arg6: memref<1x128xf32, #tpu.memory_space<vmem>>, %arg7: memref<8x128xf32, #tpu.memory_space<vmem>>) attributes {dimension_semantics = [#tpu.dimension_semantics<parallel>, #tpu.dimension_semantics<parallel>, #tpu.dimension_semantics<arbitrary>], iteration_bounds = array<i64: 1, 1, 1>, scalar_prefetch = 0 : i64, scratch_operands = 0 : i64, tpu.core_type = #tpu.core_type<tc>, window_params = [{transform_indices = @transform_0, window_bounds = array<i64: 8, 128>}, {transform_indices = @transform_1, window_bounds = array<i64: 128, 128>}, {transform_indices = @transform_2, window_bounds = array<i64: 8, 1>}, {transform_indices = @transform_3, window_bounds = array<i64: 1, 128>}, {transform_indices = @transform_4, window_bounds = array<i64: 8, 128>}]} {
    %c0_i32 = arith.constant 0 : i32
    %0 = arith.cmpi eq, %arg2, %c0_i32 : i32
    %1 = arith.extui %0 : i1 to i32
    %c0_i32_0 = arith.constant 0 : i32
    %2 = arith.cmpi ne, %1, %c0_i32_0 : i32
    scf.if %2 {
      %cst_10 = arith.constant 0.000000e+00 : f32
      %12 = vector.broadcast %cst_10 : f32 to vector<8x128xf32>
      %c0_11 = arith.constant 0 : index
      %c0_12 = arith.constant 0 : index
      %13 = vector.load %arg7[%c0_11, %c0_12] : memref<8x128xf32, #tpu.memory_space<vmem>>, vector<8x128xf32>
      tpu.vector_store %arg7[%c0_11, %c0_12], %12 {strides = array<i32>} : memref<8x128xf32, #tpu.memory_space<vmem>>, vector<8x128xf32>,
    } else {
    }
    %c0 = arith.constant 0 : index
    %c0_1 = arith.constant 0 : index
    %3 = vector.load %arg7[%c0, %c0_1] : memref<8x128xf32, #tpu.memory_space<vmem>>, vector<8x128xf32>
    %c0_2 = arith.constant 0 : index
    %c0_3 = arith.constant 0 : index
    %4 = vector.load %arg3[%c0_2, %c0_3] : memref<8x128xbf16, #tpu.memory_space<vmem>>, vector<8x128xbf16>
    %c0_4 = arith.constant 0 : index
    %c0_5 = arith.constant 0 : index
    %5 = vector.load %arg4[%c0_4, %c0_5] : memref<128x128xbf16, #tpu.memory_space<vmem>>, vector<128x128xbf16>
    %cst = arith.constant dense<0.000000e+00> : vector<8x128xf32>
    %6 = tpu.matmul %4, %5, %cst {dimension_numbers = #tpu.dot_dimension_numbers<[1], [1], [0], [0], [0, 0, 1, 0], [], []>} : vector<8x128xbf16>, vector<128x128xbf16>, vector<8x128xf32> -> vector<8x128xf32>
    %7 = arith.addf %3, %6 : vector<8x128xf32>
    %c0_6 = arith.constant 0 : index
    %c0_7 = arith.constant 0 : index
    %8 = vector.load %arg7[%c0_6, %c0_7] : memref<8x128xf32, #tpu.memory_space<vmem>>, vector<8x128xf32>
    tpu.vector_store %arg7[%c0_6, %c0_7], %7 {strides = array<i32>} : memref<8x128xf32, #tpu.memory_space<vmem>>, vector<8x128xf32>,
    %c0_i32_8 = arith.constant 0 : i32
    %9 = arith.cmpi eq, %arg2, %c0_i32_8 : i32
    %10 = arith.extui %9 : i1 to i32
    %c0_i32_9 = arith.constant 0 : i32
    %11 = arith.cmpi ne, %10, %c0_i32_9 : i32
    scf.if %11 {
      %c0_10 = arith.constant 0 : index
      %c0_11 = arith.constant 0 : index
      %12 = vector.load %arg5[%c0_10, %c0_11] : memref<8x1xf32, #tpu.memory_space<vmem>>, vector<8x1xf32>
      %c0_12 = arith.constant 0 : index
      %c0_13 = arith.constant 0 : index
      %13 = vector.load %arg6[%c0_12, %c0_13] : memref<1x128xf32, #tpu.memory_space<vmem>>, vector<1x128xf32>
      %14 = vector.broadcast %12 : vector<8x1xf32> to vector<8x128xf32>
      %15 = vector.broadcast %13 : vector<1x128xf32> to vector<8x128xf32>
      %16 = arith.addf %14, %15 : vector<8x128xf32>
      %c0_14 = arith.constant 0 : index
      %c0_15 = arith.constant 0 : index
      %17 = vector.load %arg7[%c0_14, %c0_15] : memref<8x128xf32, #tpu.memory_space<vmem>>, vector<8x128xf32>
      %cst_16 = arith.constant 2.000000e+00 : f32
      %18 = vector.broadcast %cst_16 : f32 to vector<8x128xf32>
      %19 = arith.mulf %18, %17 : vector<8x128xf32>
      %20 = arith.subf %16, %19 : vector<8x128xf32>
      %cst_17 = arith.constant 0.000000e+00 : f32
      %21 = vector.broadcast %cst_17 : f32 to vector<8x128xf32>
      %22 = arith.maximumf %20, %21 : vector<8x128xf32>
      %23 = math.sqrt %22 : vector<8x128xf32>
      %c0_18 = arith.constant 0 : index
      %c0_19 = arith.constant 0 : index
      %24 = vector.load %arg7[%c0_18, %c0_19] : memref<8x128xf32, #tpu.memory_space<vmem>>, vector<8x128xf32>
      tpu.vector_store %arg7[%c0_18, %c0_19], %23 {strides = array<i32>} : memref<8x128xf32, #tpu.memory_space<vmem>>, vector<8x128xf32>,
    } else {
    }
    return
  }
  func.func @transform_0(%arg0: i32, %arg1: i32, %arg2: i32) -> (i32, i32) {
    %c0_i32 = arith.constant 0 : i32
    return %arg0, %arg2 : i32, i32
  }
  func.func @transform_1(%arg0: i32, %arg1: i32, %arg2: i32) -> (i32, i32) {
    %c0_i32 = arith.constant 0 : i32
    return %arg1, %arg2 : i32, i32
  }
  func.func @transform_2(%arg0: i32, %arg1: i32, %arg2: i32) -> (i32, i32) {
    %c0_i32 = arith.constant 0 : i32
    %c0_i32_0 = arith.constant 0 : i32
    return %arg0, %c0_i32 : i32, i32
  }
  func.func @transform_3(%arg0: i32, %arg1: i32, %arg2: i32) -> (i32, i32) {
    %c0_i32 = arith.constant 0 : i32
    %c0_i32_0 = arith.constant 0 : i32
    return %c0_i32, %arg1 : i32, i32
  }
  func.func @transform_4(%arg0: i32, %arg1: i32, %arg2: i32) -> (i32, i32) {
    %c0_i32 = arith.constant 0 : i32
    return %arg0, %arg1 : i32, i32
  }
}

</mosaic_0001>

<bundles_post_ra>
// kernel: tpu_custom_call.1
= control target key start
LH: loop header
LB: loop body
LE: loop exit
PB: predicated region body
PF: predicated region fallthrough
CT: control target
= control target key end

     0   :  { %9 = vsyncpa [#allocation3], 0  ;;  %s337_s0 = inlined_call_operand.vmem [shape: bf16[8,128], index: 0, kind: input, shape index: {}]   ;;  %s338_s1 = inlined_call_operand.hbm [shape: bf16[128,128], index: 1, kind: input, shape index: {}]   ;;  %s339_s2 = inlined_call_operand.vmem [shape: f32[8,1], index: 2, kind: input, shape index: {}]   ;;  %s340_s3 = inlined_call_operand.vmem [shape: f32[1,128], index: 3, kind: input, shape index: {}]   ;;  %s341_s4 = inlined_call_operand.hbm [shape: f32[8,128], index: 4, kind: output, shape index: {}]  }
   0x1   :  { %10 = vsyncpa [#allocation4], 0  ;;  %s290_s15 = smov [#allocation2]  }
   0x2   :  { %s18_s16 = sshll.u32 %s290_s15, 4  ;;  %s19_s16 = int_to_ptr.vmem [resolvable:$true] %s18_s16 }
   0x3   :  { %s254_s17 = scalar_lea.vmem %s19_s16, 1024  ;;  %p259_p1 = scmp.lt.s32.totalorder %s19_s16, %s19_s16 }
   0x4   :  { %p255_p0 = scmp.ne.s32.totalorder %s19_s16, %s254_s17  ;;  %p260_p2 = scmp.lt.s32.totalorder %s254_s17, %s254_s17 }
   0x6   :  { %p261_p3 = por %p260_p2, %p259_p1 }
   0x8   :  { %p262_p4 = pnand %p261_p3, %p255_p0 }
   0xa   :  { %265 = shalt.err (!%p262_p4)
}
   0xb   :  { %s291_s18 = smov 64   ;;  %s292_s19 = smov 4  }
   0xc   :  { %24 = dma.hbm_to_vmem [thread:$0]  %s338_s1, 1024, %s19_s16, [#allocation3], %s291_s18, %s291_s18, %s292_s19  }
   0xd   :  { %286 = dma.done.wait [#allocation3], 1024  }
   0xe   :  { %287 = vsyncadd [#allocation3], 4294966272  ;;  %v293_v0 = vmov 0.0   ;;  %vm294_vm0 = vmmov 0   ;;  %v295_v1 = vmov 0   ;;  %v236_v2 = vld [vmem:[#allocation2 + $0x38] sm:$0xff]  }
   0xf   :  { %208 = vmatprep.subr.bf16.mxu0 %v293_v0  ;;  %224 = vmatprep.mubr.msk.bf16.mxu0 %vm294_vm0, %v293_v0  ;;  %v237_v3 = vld [vmem:[#allocation2 + $0x30] sm:$0xff]   ;;  %v149_v4 = vld [vmem:[%s339_s2] sm:$0xff]  ;;  %v238_v5 = vld [vmem:[#allocation2 + $0x28] sm:$0xff]   ;;  %s296_s26 = smov [#allocation5]  }
  0x10   :  { %235 = vset.pattern.permute.xlu0 %v295_v1  ;;  %209 = vmatpush3.bf16.xpose.msra.mxu0 %v236_v2  ;;  %v239_v6 = vld [vmem:[#allocation2 + $0x20] sm:$0xff]   ;;  %v240_v7 = vld [vmem:[#allocation2 + $0x18] sm:$0xff]   ;;  %v241_v8 = vld [vmem:[#allocation2 + $0x10] sm:$0xff]   ;;  %s181_s27 = sshll.u32 %s296_s26, 4  ;;  %s182_s27 = int_to_ptr.vmem [resolvable:$true] %s181_s27 }
  0x11   :  { %210 = vmatprep.subr.bf16.mxu0 %v293_v0  ;;  %153 = vperm.xlu0 %235, %v149_v4   ;;  %v242_v9 = vld [vmem:[#allocation2 + $0x8] sm:$0xff]   ;;  %v243_v10 = vld [vmem:[#allocation2] sm:$0xff]   ;;  %p271_p6 = scmp.lt.s32.totalorder %s182_s27, %s182_s27 }
  0x12   :  { %v39_v11 = vld [vmem:[%s337_s0] sm:$0xf]  ;;  %s266_s0 = scalar_lea.vmem %s182_s27, 128 }
  0x13   :  { %v198_v12 = vld [vmem:[%s340_s3] ss:$0 sm:$0xff]  ;;  %p267_p5 = scmp.ne.s32.totalorder %s182_s27, %s266_s0  ;;  %p272_p7 = scmp.lt.s32.totalorder %s266_s0, %s266_s0 }
  0x15   :  { %p273_p8 = por %p272_p7, %p271_p6 }
  0x17   :  { %p274_p9 = pnand %p273_p8, %p267_p5 }
  0x18   :  { %211 = vmatpush3.bf16.xpose.msra.mxu0 %v237_v3 }
  0x19   :  { %212 = vmatprep.subr.bf16.mxu0 %v293_v0 }
  0x20   :  { %213 = vmatpush3.bf16.xpose.msra.mxu0 %v238_v5 }
  0x21   :  { %214 = vmatprep.subr.bf16.mxu0 %v293_v0 }
  0x28   :  { %215 = vmatpush3.bf16.xpose.msra.mxu0 %v239_v6 }
  0x29   :  { %216 = vmatprep.subr.bf16.mxu0 %v293_v0 }
  0x30   :  { %217 = vmatpush3.bf16.xpose.msra.mxu0 %v240_v7 }
  0x31   :  { %218 = vmatprep.subr.bf16.mxu0 %v293_v0 }
  0x38   :  { %219 = vmatpush3.bf16.xpose.msra.mxu0 %v241_v8 }
  0x39   :  { %220 = vmatprep.subr.bf16.mxu0 %v293_v0 }
  0x40   :  { %221 = vmatpush3.bf16.xpose.msra.mxu0 %v242_v9 }
  0x41   :  { %222 = vmatprep.subr.bf16.mxu0 %v293_v0 }
  0x48   :  { %223 = vmatpush3.bf16.xpose.msra.mxu0 %v243_v10 }
  0x4f   :  { %225 = vmatmul.mubr.bf16.vlgmr.msra.gmra.mxu0 %v39_v11 }
  0x8c   :  { %v154_v13 = vpop.permute.xlu0 %153 }
  0x8d   :  { %v162_v15 = vadd.f32 %v198_v12, %v154_v13 }
 0x10f   :  { %v138_v14 = vpop.f32.mrf.mxu0 }
 0x110   :  { %v164_v17 = vmul.f32 2.0, %v138_v14 }
 0x111   :  { %v226_v16 = vpop.f32.mrf.mxu0 }
 0x112   :  { %v165_v19 = vsub.f32 %v162_v15, %v164_v17 }
 0x113   :  { %v141_v18 = vpop.f32.mrf.mxu0 }
 0x114   :  { %v166_v21 = vmax.f32 %v165_v19, 0.0 }
 0x115   :  { %v227_v20 = vpop.f32.mrf.mxu0 }
 0x116   :  { %244 = vrsqrt.f32 %v166_v21  ;;  %vm169_vm1 = vcmp.eq.f32.partialorder %v166_v21, inf  ;;  %v172_v24 = vand.u32 2147483648, %v166_v21  ;;  %vm171_vm2 = vcmp.eq.f32.partialorder %v166_v21, 0.0 }
 0x123   :  { %v245_v22 = vpop.eup %244 }
 0x124   :  { %v168_v23 = vmul.f32 %v245_v22, %v166_v21 }
 0x126   :  { %v170_v25 = vsel %vm169_vm1, %v166_v21, %v168_v23 }
 0x127   :  { %v173_v26 = vsel %vm171_vm2, %v172_v24, %v170_v25 }
 0x128   :  { %174 = vst [vmem:[#allocation5] sm:$0xff] %v173_v26 }
 0x129   :  { %277 = shalt.err (!%p274_p9)
}
 0x12a   :  { %184 = dma.vmem_to_hbm [thread:$0]  %s182_s27, 128, %s341_s4, [#allocation4]  }
 0x12b   :  { %288 = dma.done.wait [#allocation4], 128  }
 0x12c   :  { %289 = vsyncadd [#allocation4], 4294967168 }
 0x12d   :  { %188 = vsyncpa [#allocation3], 1 }
 0x12e   :  { %189 = vsyncpa [#allocation4], 1 }

</bundles_post_ra>
